<compile_context>
chip_gen: v5e
topology: v5e:2x2
jax: 0.10.0
libtpu: 0.0.40
codegen_flags: <defaults>
</compile_context>

<pallas_src>
import jax
import jax.numpy as jnp
import numpy as np
from jax import lax
from jax.experimental import pallas as pl
from jax.experimental.pallas import tpu as pltpu

LN_EPS = 1e-5  # torch.nn.LayerNorm default


def attention_block_kernel(x_ref, pr_ref, w1t_ref, w2_ref, out_ref):
    f32 = jnp.float32
    bt, C, HW = x_ref.shape

    # Packed per-channel params: a single lane-dense (6, C) tile.
    pr = pr_ref[...]
    wc = pr[0:1, :]        # (1, C)  conv (C -> 1) weight
    b1 = pr[1:2, :]        # (1, C)  transformer[0] bias
    gamma = pr[2:3, :]     # (1, C)  LayerNorm weight
    beta = pr[3:4, :]      # (1, C)  LayerNorm bias
    b2 = pr[4:5, :]        # (1, C)  transformer[3] bias
    bc = pr[5:6, 0:1]      # (1, 1)  conv (C -> 1) bias (cancels in softmax, kept for fidelity)

    # route_2 logits for all bt batch elements in one batched MXU matvec:
    # (bt, 1, C) x (bt, C, HW) -> (bt, 1, HW).
    wc_b = jnp.broadcast_to(wc[None], (bt, 1, C))
    logits = lax.dot_general(
        wc_b, x_ref[...].astype(f32),
        dimension_numbers=(((2,), (1,)), ((0,), (0,))),
        preferred_element_type=f32) + bc                                  # (bt, 1, HW)

    # softmax over HW; normalisation folded into the pooled feature below.
    m = jnp.max(logits, axis=-1, keepdims=True)                           # (bt, 1, 1)
    e = jnp.exp(logits - m)                                               # (bt, 1, HW)
    inv_s = pl.reciprocal(jnp.sum(e, axis=-1, keepdims=True), approx=False)

    # pooled feature = route_1 @ softmax(route_2):
    # (bt, 1, HW) x (bt, C, HW)^T_s -> (bt, 1, C), normalised via inv_s.
    feat3 = lax.dot_general(
        e, x_ref[...].astype(f32),
        dimension_numbers=(((2,), (2,)), ((0,), (0,))),
        preferred_element_type=f32) * inv_s                               # (bt, 1, C)
    feat = feat3[:, 0, :]                                                 # (bt, C)

    # transformer[0]: 1x1 conv (C -> C), row form (uses W1^T).
    t1 = jnp.dot(feat, w1t_ref[...], preferred_element_type=f32) + b1     # (bt, C)

    # transformer[1]: LayerNorm([C,1,1]) -> normalize over the C values
    # (biased variance, matching torch).
    mu = jnp.mean(t1, axis=-1, keepdims=True)
    var = jnp.mean((t1 - mu) ** 2, axis=-1, keepdims=True)
    ln = (t1 - mu) * lax.rsqrt(var + LN_EPS) * gamma + beta               # (bt, C)

    # transformer[2]: ReLU.
    act = jnp.maximum(ln, 0.0)                                            # (bt, C)

    # transformer[3]: 1x1 conv (C -> C): (bt, C_in) x W2(C_out, C_in) -> (bt, C_out).
    t2 = lax.dot_general(act, w2_ref[...], (((1,), (1,)), ((), ())),
                         preferred_element_type=f32) + b2                 # (bt, C)

    # residual: out = x + fine_grained (broadcast over the spatial lanes),
    # written back in the input dtype.
    out_ref[...] = (x_ref[...].astype(f32) + t2[:, :, None]).astype(out_ref.dtype)


def attention_block(x, params):
    """x: (B, C, H, W), any float dtype.  Returns (B, C, H, W) in x.dtype."""
    B, C, H, W = x.shape
    HW = H * W
    xf = x.reshape(B, C, HW)                         # native dtype; no pad, no cast
    dtype_bytes = jnp.dtype(xf.dtype).itemsize
    per_batch_bytes = C * HW * dtype_bytes
    per_batch_f32 = C * HW * 4
    weight_bytes = (6 * C + 2 * C * C) * 4

    # Generation-aware budgets (fallback = conservative v7x-like numbers).
    try:
        vmem_cap = int(pltpu.get_tpu_info().vmem_capacity_bytes)
    except Exception:
        vmem_cap = 64 << 20
    if vmem_cap <= (64 << 20):                       # v7x-like: 64 MiB/TC, 2 TensorCores
        vmem_budget = min(44 << 20, max(16 << 20, vmem_cap - (16 << 20)))
        target_block_bytes = 4 << 20
        min_grid_steps = 4                           # >= 2 pipelined steps per core
    else:                                            # v5e / v6e: 128 MiB, single TC
        vmem_budget = min(100 << 20, vmem_cap - (16 << 20))
        target_block_bytes = 8 << 20
        min_grid_steps = 2

    def fits(n):
        blk = n * per_batch_bytes
        need = 4 * blk + 2 * n * per_batch_f32 + 2 * weight_bytes
        return need + (2 << 20) <= vmem_budget

    # Batch blocking: large per-step DMAs, bt divides B (no batch padding),
    # and enough grid steps to keep the software pipeline / both cores busy.
    bt = max(1, min(B, target_block_bytes // per_batch_bytes))
    while bt > 1 and not fits(bt):
        bt -= 1
    while bt > 1 and B % bt:
        bt -= 1
    min_steps = min(min_grid_steps, B)
    while bt > 1 and (B // bt) < min_steps:
        bt -= 1
        while B % bt:
            bt -= 1
    grid = (B // bt,)

    f32 = jnp.float32
    packed = jnp.stack([
        params["wc"].reshape(C).astype(f32),
        params["b1"].reshape(C).astype(f32),
        params["gamma"].reshape(C).astype(f32),
        params["beta"].reshape(C).astype(f32),
        params["b2"].reshape(C).astype(f32),
        jnp.full((C,), params["bc"], f32),           # bc replicated into one packed row
    ], axis=0)                                       # (6, C) lane-dense param tile
    w1t = params["w1"].astype(f32).T                 # (C_in, C_out) = W1^T
    w2 = params["w2"].astype(f32)                    # (C_out, C_in)

    # Explicit VMEM accounting: 2x in block + 2x out block + f32 temps + weights.
    blk = bt * per_batch_bytes
    need = 4 * blk + 2 * bt * per_batch_f32 + 2 * weight_bytes
    vmem_limit = int(max(need + (4 << 20),
                         min(vmem_cap - (8 << 20), max(32 << 20, need + (8 << 20)))))

    cost = pl.CostEstimate(
        flops=int(B * (5 * C * HW + 4 * C * C)),
        transcendentals=int(B * HW + 2 * B),
        bytes_accessed=int(2 * B * C * HW * dtype_bytes + weight_bytes),
    )

    out = pl.pallas_call(
        attention_block_kernel,
        out_shape=jax.ShapeDtypeStruct((B, C, HW), xf.dtype),
        grid_spec=pltpu.PrefetchScalarGridSpec(
            num_scalar_prefetch=0,
            grid=grid,
            in_specs=[
                pl.BlockSpec((bt, C, HW), lambda i: (i, 0, 0)),   # x, native dtype
                pl.BlockSpec((6, C), lambda i: (0, 0)),           # packed per-C params
                pl.BlockSpec((C, C), lambda i: (0, 0)),           # W1^T
                pl.BlockSpec((C, C), lambda i: (0, 0)),           # W2
            ],
            out_specs=pl.BlockSpec((bt, C, HW), lambda i: (i, 0, 0)),
        ),
        compiler_params=pltpu.CompilerParams(
            dimension_semantics=("parallel",),
            vmem_limit_bytes=vmem_limit),
        cost_estimate=cost,
        input_output_aliases={0: 0},     # out = x + broadcasted correction
    )(xf, packed, w1t, w2)

    return out.reshape(B, C, H, W)


def attention_block_ref(x, params):
    """Pure-JAX reference mirroring the PyTorch forward (full f32 precision)."""
    with jax.default_matmul_precision("highest"):
        B, C, H, W = x.shape
        xf = x.reshape(B, C, H * W).astype(jnp.float32)
        logits = jnp.einsum("c,bcs->bs", params["wc"], xf) + params["bc"]
        attn = jax.nn.softmax(logits, axis=-1)
        feat = jnp.einsum("bcs,bs->bc", xf, attn)                     # (B, C)
        t1 = feat @ params["w1"].T + params["b1"]
        mu = t1.mean(axis=-1, keepdims=True)
        var = t1.var(axis=-1, keepdims=True)
        ln = (t1 - mu) / jnp.sqrt(var + LN_EPS) * params["gamma"] + params["beta"]
        act = jnp.maximum(ln, 0.0)
        t2 = act @ params["w2"].T + params["b2"]
        return (x.astype(jnp.float32) + t2[:, :, None, None]).astype(x.dtype)


def make_params(key, C):
    """Parameters exactly as the PyTorch module initialises them."""
    k1, k2, k3, k4 = jax.random.split(key, 4)
    return {
        # self.conv = Conv2d(C, 1, kernel_size=1): weight (1, C, 1, 1), bias (1,)
        "wc": 0.1 * jax.random.normal(k1, (C,), jnp.float32),
        "bc": 0.1 * jax.random.normal(k2, (), jnp.float32),
        # transformer[0] = Conv2d(C, C, 1)
        "w1": 0.1 * jax.random.normal(k3, (C, C), jnp.float32),
        "b1": 0.1 * jax.random.normal(k4, (C,), jnp.float32),
        # transformer[1] = LayerNorm([C, 1, 1]) default init: weight=1, bias=0
        "gamma": jnp.ones((C,), jnp.float32),
        "beta": jnp.zeros((C,), jnp.float32),
        # transformer[3] = Conv2d(C, C, 1) with nn.init.constant_(w, 0), constant_(b, 0)
        "w2": jnp.zeros((C, C), jnp.float32),
        "b2": jnp.zeros((C,), jnp.float32),
    }


def make_random_params(key, C):
    """Non-degenerate parameters to exercise the full transformer path."""
    ks = jax.random.split(key, 7)
    return {
        "wc": 0.1 * jax.random.normal(ks[0], (C,), jnp.float32),
        "bc": 0.1 * jax.random.normal(ks[1], (), jnp.float32),
        "w1": 0.1 * jax.random.normal(ks[2], (C, C), jnp.float32),
        # well-spread bias keeps the LayerNorm variance away from zero so the
        # numerical comparison below is well-conditioned
        "b1": jnp.linspace(-1.0, 1.0, C).astype(jnp.float32),
        "gamma": 1.0 + 0.1 * jax.random.normal(ks[3], (C,), jnp.float32),
        "beta": 0.1 * jax.random.normal(ks[4], (C,), jnp.float32),
        "w2": 0.1 * jax.random.normal(ks[5], (C, C), jnp.float32),
        "b2": 0.1 * jax.random.normal(ks[6], (C,), jnp.float32),
    }


if __name__ == "__main__":
    B, C, H, W = 2, 4, 16, 16
    key = jax.random.PRNGKey(0)
    kx, kp, kq = jax.random.split(key, 3)
    x = jax.random.normal(kx, (B, C, H, W), jnp.float32)

    # 1) Module-faithful parameters: transformer[-1] is zero-initialised,
    #    so the forward is exactly the identity.
    params = make_params(kp, C)
    out = jax.block_until_ready(attention_block(x, params))
    ref = attention_block_ref(x, params)
    np.testing.assert_allclose(np.asarray(out), np.asarray(ref), rtol=1e-5, atol=1e-5)
    np.testing.assert_allclose(np.asarray(out), np.asarray(x), rtol=1e-6, atol=1e-6)

    # 2) Randomised parameters exercise the full softmax-pool -> conv -> LayerNorm
    #    -> ReLU -> conv -> residual path.  Tolerance accounts for the
    #    default-precision MXU matmuls vs the 'highest'-precision reference.
    params_rnd = make_random_params(kq, C)
    out_rnd = jax.block_until_ready(attention_block(x, params_rnd))
    ref_rnd = attention_block_ref(x, params_rnd)
    np.testing.assert_allclose(np.asarray(out_rnd), np.asarray(ref_rnd),
                               rtol=2e-2, atol=2e-2)

    print("KERNEL_OK")
</pallas_src>

<mosaic_0001>
module attributes {stable_mosaic.version = 11 : i64} {
  func.func @attention_block_kernel(%arg0: i32, %arg1: memref<1x4x256xf32, #tpu.memory_space<vmem>>, %arg2: memref<6x4xf32, #tpu.memory_space<vmem>>, %arg3: memref<4x4xf32, #tpu.memory_space<vmem>>, %arg4: memref<4x4xf32, #tpu.memory_space<vmem>>, %arg5: memref<1x4x256xf32, #tpu.memory_space<vmem>>) attributes {dimension_semantics = [#tpu.dimension_semantics<parallel>], iteration_bounds = array<i64: 2>, scalar_prefetch = 0 : i64, scratch_operands = 0 : i64, tpu.core_type = #tpu.core_type<tc>, window_params = [{transform_indices = @transform_0, window_bounds = array<i64: 1, 4, 256>}, {pipeline_mode = #tpu.pipeline_mode<synchronous>, transform_indices = @transform_1, window_bounds = array<i64: 6, 4>}, {pipeline_mode = #tpu.pipeline_mode<synchronous>, transform_indices = @transform_2, window_bounds = array<i64: 4, 4>}, {pipeline_mode = #tpu.pipeline_mode<synchronous>, transform_indices = @transform_3, window_bounds = array<i64: 4, 4>}, {transform_indices = @transform_4, window_bounds = array<i64: 1, 4, 256>}]} {
    %c0 = arith.constant 0 : index
    %c0_0 = arith.constant 0 : index
    %0 = vector.load %arg2[%c0, %c0_0] : memref<6x4xf32, #tpu.memory_space<vmem>>, vector<6x4xf32>
    %1 = vector.extract_strided_slice %0 {offsets = [0, 0], sizes = [1, 4], strides = [1, 1]} : vector<6x4xf32> to vector<1x4xf32>
    %2 = vector.extract_strided_slice %0 {offsets = [1, 0], sizes = [1, 4], strides = [1, 1]} : vector<6x4xf32> to vector<1x4xf32>
    %3 = vector.extract_strided_slice %0 {offsets = [2, 0], sizes = [1, 4], strides = [1, 1]} : vector<6x4xf32> to vector<1x4xf32>
    %4 = vector.extract_strided_slice %0 {offsets = [3, 0], sizes = [1, 4], strides = [1, 1]} : vector<6x4xf32> to vector<1x4xf32>
    %5 = vector.extract_strided_slice %0 {offsets = [4, 0], sizes = [1, 4], strides = [1, 1]} : vector<6x4xf32> to vector<1x4xf32>
    %6 = vector.extract_strided_slice %0 {offsets = [5, 0], sizes = [1, 1], strides = [1, 1]} : vector<6x4xf32> to vector<1x1xf32>
    %7 = vector.shape_cast %1 : vector<1x4xf32> to vector<1x1x4xf32>
    %c0_1 = arith.constant 0 : index
    %c0_2 = arith.constant 0 : index
    %c0_3 = arith.constant 0 : index
    %8 = vector.load %arg1[%c0_1, %c0_2, %c0_3] : memref<1x4x256xf32, #tpu.memory_space<vmem>>, vector<1x4x256xf32>
    %cst = arith.constant dense<0.000000e+00> : vector<1x1x256xf32>
    %9 = tpu.matmul %7, %8, %cst {dimension_numbers = #tpu.dot_dimension_numbers<[2], [1], [1], [2], [0, 0, 0, 1, 1, 2], [0], [0]>} : vector<1x1x4xf32>, vector<1x4x256xf32>, vector<1x1x256xf32> -> vector<1x1x256xf32>
    %10 = vector.shape_cast %6 : vector<1x1xf32> to vector<1x1x1xf32>
    %11 = vector.broadcast %10 : vector<1x1x1xf32> to vector<1x1x256xf32>
    %12 = arith.addf %9, %11 : vector<1x1x256xf32>
    %cst_4 = arith.constant dense<0xFF800000> : vector<1x1xf32>
    %13 = vector.multi_reduction <maximumf>, %12, %cst_4 [2] : vector<1x1x256xf32> to vector<1x1xf32>
    %14 = vector.shape_cast %13 : vector<1x1xf32> to vector<1x1x1xf32>
    %15 = vector.broadcast %14 : vector<1x1x1xf32> to vector<1x1x256xf32>
    %16 = arith.subf %12, %15 : vector<1x1x256xf32>
    %17 = math.exp %16 : vector<1x1x256xf32>
    %cst_5 = arith.constant dense<0.000000e+00> : vector<1x1xf32>
    %18 = vector.multi_reduction <add>, %17, %cst_5 [2] : vector<1x1x256xf32> to vector<1x1xf32>
    %19 = vector.shape_cast %18 : vector<1x1xf32> to vector<1x1x1xf32>
    %20 = tpu.reciprocal %19 : vector<1x1x1xf32> -> vector<1x1x1xf32>
    %c0_6 = arith.constant 0 : index
    %c0_7 = arith.constant 0 : index
    %c0_8 = arith.constant 0 : index
    %21 = vector.load %arg1[%c0_6, %c0_7, %c0_8] : memref<1x4x256xf32, #tpu.memory_space<vmem>>, vector<1x4x256xf32>
    %cst_9 = arith.constant dense<0.000000e+00> : vector<1x1x4xf32>
    %22 = tpu.matmul %17, %21, %cst_9 {dimension_numbers = #tpu.dot_dimension_numbers<[2], [2], [1], [1], [0, 0, 0, 1, 1, 1], [0], [0]>} : vector<1x1x256xf32>, vector<1x4x256xf32>, vector<1x1x4xf32> -> vector<1x1x4xf32>
    %23 = vector.broadcast %20 : vector<1x1x1xf32> to vector<1x1x4xf32>
    %24 = arith.mulf %22, %23 : vector<1x1x4xf32>
    %25 = vector.shape_cast %24 : vector<1x1x4xf32> to vector<1x4xf32>
    %c0_10 = arith.constant 0 : index
    %c0_11 = arith.constant 0 : index
    %26 = vector.load %arg3[%c0_10, %c0_11] : memref<4x4xf32, #tpu.memory_space<vmem>>, vector<4x4xf32>
    %cst_12 = arith.constant dense<0.000000e+00> : vector<1x4xf32>
    %27 = tpu.matmul %25, %26, %cst_12 {dimension_numbers = #tpu.dot_dimension_numbers<[1], [0], [0], [1], [0, 0, 1, 1], [], []>} : vector<1x4xf32>, vector<4x4xf32>, vector<1x4xf32> -> vector<1x4xf32>
    %28 = arith.addf %27, %2 : vector<1x4xf32>
    %cst_13 = arith.constant dense<0.000000e+00> : vector<1xf32>
    %29 = vector.multi_reduction <add>, %28, %cst_13 [1] : vector<1x4xf32> to vector<1xf32>
    %30 = vector.shape_cast %29 : vector<1xf32> to vector<1x1xf32>
    %cst_14 = arith.constant 4.000000e+00 : f32
    %31 = vector.broadcast %cst_14 : f32 to vector<1x1xf32>
    %32 = arith.divf %30, %31 : vector<1x1xf32>
    %33 = vector.broadcast %32 : vector<1x1xf32> to vector<1x4xf32>
    %34 = arith.subf %28, %33 : vector<1x4xf32>
    %35 = arith.mulf %34, %34 : vector<1x4xf32>
    %cst_15 = arith.constant dense<0.000000e+00> : vector<1xf32>
    %36 = vector.multi_reduction <add>, %35, %cst_15 [1] : vector<1x4xf32> to vector<1xf32>
    %37 = vector.shape_cast %36 : vector<1xf32> to vector<1x1xf32>
    %cst_16 = arith.constant 4.000000e+00 : f32
    %38 = vector.broadcast %cst_16 : f32 to vector<1x1xf32>
    %39 = arith.divf %37, %38 : vector<1x1xf32>
    %40 = vector.broadcast %32 : vector<1x1xf32> to vector<1x4xf32>
    %41 = arith.subf %28, %40 : vector<1x4xf32>
    %cst_17 = arith.constant 9.99999974E-6 : f32
    %42 = vector.broadcast %cst_17 : f32 to vector<1x1xf32>
    %43 = arith.addf %39, %42 : vector<1x1xf32>
    %44 = math.rsqrt %43 : vector<1x1xf32>
    %45 = vector.broadcast %44 : vector<1x1xf32> to vector<1x4xf32>
    %46 = arith.mulf %41, %45 : vector<1x4xf32>
    %47 = arith.mulf %46, %3 : vector<1x4xf32>
    %48 = arith.addf %47, %4 : vector<1x4xf32>
    %cst_18 = arith.constant 0.000000e+00 : f32
    %49 = vector.broadcast %cst_18 : f32 to vector<1x4xf32>
    %50 = arith.maximumf %48, %49 : vector<1x4xf32>
    %c0_19 = arith.constant 0 : index
    %c0_20 = arith.constant 0 : index
    %51 = vector.load %arg4[%c0_19, %c0_20] : memref<4x4xf32, #tpu.memory_space<vmem>>, vector<4x4xf32>
    %cst_21 = arith.constant dense<0.000000e+00> : vector<1x4xf32>
    %52 = tpu.matmul %50, %51, %cst_21 {dimension_numbers = #tpu.dot_dimension_numbers<[1], [1], [0], [0], [0, 0, 1, 0], [], []>} : vector<1x4xf32>, vector<4x4xf32>, vector<1x4xf32> -> vector<1x4xf32>
    %53 = arith.addf %52, %5 : vector<1x4xf32>
    %c0_22 = arith.constant 0 : index
    %c0_23 = arith.constant 0 : index
    %c0_24 = arith.constant 0 : index
    %54 = vector.load %arg1[%c0_22, %c0_23, %c0_24] : memref<1x4x256xf32, #tpu.memory_space<vmem>>, vector<1x4x256xf32>
    %55 = vector.shape_cast %53 : vector<1x4xf32> to vector<1x4x1xf32>
    %56 = vector.broadcast %55 : vector<1x4x1xf32> to vector<1x4x256xf32>
    %57 = arith.addf %54, %56 : vector<1x4x256xf32>
    %c0_25 = arith.constant 0 : index
    %c0_26 = arith.constant 0 : index
    %c0_27 = arith.constant 0 : index
    %58 = vector.load %arg5[%c0_25, %c0_26, %c0_27] : memref<1x4x256xf32, #tpu.memory_space<vmem>>, vector<1x4x256xf32>
    tpu.vector_store %arg5[%c0_25, %c0_26, %c0_27], %57 {strides = array<i32>} : memref<1x4x256xf32, #tpu.memory_space<vmem>>, vector<1x4x256xf32>,
    return
  }
  func.func @transform_0(%arg0: i32) -> (i32, i32, i32) {
    %c0_i32 = arith.constant 0 : i32
    %c0_i32_0 = arith.constant 0 : i32
    %c0_i32_1 = arith.constant 0 : i32
    return %arg0, %c0_i32, %c0_i32_0 : i32, i32, i32
  }
  func.func @transform_1(%arg0: i32) -> (i32, i32) {
    %c0_i32 = arith.constant 0 : i32
    %c0_i32_0 = arith.constant 0 : i32
    %c0_i32_1 = arith.constant 0 : i32
    return %c0_i32, %c0_i32_0 : i32, i32
  }
  func.func @transform_2(%arg0: i32) -> (i32, i32) {
    %c0_i32 = arith.constant 0 : i32
    %c0_i32_0 = arith.constant 0 : i32
    %c0_i32_1 = arith.constant 0 : i32
    return %c0_i32, %c0_i32_0 : i32, i32
  }
  func.func @transform_3(%arg0: i32) -> (i32, i32) {
    %c0_i32 = arith.constant 0 : i32
    %c0_i32_0 = arith.constant 0 : i32
    %c0_i32_1 = arith.constant 0 : i32
    return %c0_i32, %c0_i32_0 : i32, i32
  }
  func.func @transform_4(%arg0: i32) -> (i32, i32, i32) {
    %c0_i32 = arith.constant 0 : i32
    %c0_i32_0 = arith.constant 0 : i32
    %c0_i32_1 = arith.constant 0 : i32
    return %arg0, %c0_i32, %c0_i32_0 : i32, i32, i32
  }
}

</mosaic_0001>

<bundles_post_ra>
// kernel: tpu_custom_call.1
= control target key start
LH: loop header
LB: loop body
LE: loop exit
PB: predicated region body
PF: predicated region fallthrough
CT: control target
= control target key end

     0   :  { %9 = vsyncpa [#allocation3], 0  ;;  %s930_s0 = inlined_call_operand.hbm [shape: f32[2,4,256], index: 0, kind: input, shape index: {}, may-alias: {0,4}]   ;;  %s931_s1 = inlined_call_operand.vmem [shape: f32[6,4], index: 1, kind: input, shape index: {}]   ;;  %s932_s2 = inlined_call_operand.vmem [shape: f32[4,4], index: 2, kind: input, shape index: {}]   ;;  %s933_s3 = inlined_call_operand.vmem [shape: f32[4,4], index: 3, kind: input, shape index: {}]   ;;  %s934_s4 = inlined_call_operand.hbm [shape: f32[2,4,256], index: 4, kind: output, shape index: {}, may-alias: {0,4}]  }
   0x1   :  { %11 = vsyncpa [#allocation3 + $0x1], 0 }
   0x2   :  { %12 = vsyncpa [#allocation4], 0 }
   0x3   :  { %14 = vsyncpa [#allocation4 + $0x1], 0  ;;  %s762_s15 = smov 0   ;;  %s764_s16 = smov 0  }
   0x4   :  { %s766_s17 = smov 0   ;;  %s768_s18 = smov 0  }
   0x5 LB: > { %s783_s19 = sadd.s32 4294967295, %s732_s18   ;;  %s550_s20 = sadd.s32 4294967294, %s732_s18   ;;  %s732_s18 = sphi %s768_s18, %s944_s18   ;;  %s728_s17 = sphi %s766_s17, %s943_s17   ;;  %s724_s16 = sphi %s764_s16, %s942_s16   ;;  %s720_s15 = sphi %s762_s15, %s941_s15  }
   0x6   : > { %s787_s21 = sadd.s32 1, %s732_s18   ;;  %s27_s22 = sadd.s32 1, %s728_s17 }
   0x7   : > { %s24_s23 = ssub.s32 %s732_s18, %s787_s21  ;;  %p34_p0 = scmp.ne.s32.totalorder %s728_s17, %s724_s16 }
   0x8   : > { %p25_p1 = scmp.eq.s32.totalorder %s24_s23, 0  ;;  %p35_p2 = scmp.eq.s32.totalorder %s732_s18, 0 }
   0x9   : > { %p40_p3 = scmp.ne.s32.totalorder %s724_s16, %s720_s15  ;;  %p41_p4 = scmp.eq.s32.totalorder %s783_s19, 0 }
   0xa   : > { %s799_s24 = scalar_select %p25_p1, %s728_s17, %s27_s22  }
   0xb   : > { %p801_p5 = por %p35_p2, %p34_p0  ;;  %p805_p6 = por %p41_p4, %p40_p3 }
   0xc   : > { %p127_p7 = scmp.eq.s32.totalorder %s783_s19, 1  ;;  %p133_p8 = scmp.eq.s32.totalorder %s550_s20, 1 }
   0xd   : > { %p586_p10 = scmp.lt.s32.totalorder %s732_s18, 2  ;;  %s162_s29 = sand.u32 1, %s728_s17  }
   0xe   : > { %p812_p11 = por %p127_p7, %p34_p0  ;;  %p816_p12 = por %p133_p8, %p40_p3 }
   0xf   : > { %s572_s30 = sshll.u32 %s732_s18, 3  ;;  %s553_s5 = sshll.u32 %s162_s29, 3 }
  0x10   : > { %s171_s8 = scalar_lea.hbm %s930_s0, %s572_s30  ;;  %s166_s10 = scalar_lea.vmem [#allocation2], %s553_s5 }
  0x11   : > { %s173_s9 = sshll.u32 %s171_s8, 4  ;;  %s175_s11 = sshll.u32 %s166_s10, 4  ;;  %s174_s9 = int_to_ptr.hbm [resolvable:$true] %s173_s9  ;;  %s176_s11 = int_to_ptr.vmem [resolvable:$true] %s175_s11 }
  0x12   : > { %p827_p13 = pnand %p586_p10, %p801_p5  ;;  %p556_p0 = scmp.ge.s32.totalorder %s732_s18, 1 }
  0x13   : > { %p180_p1 = scmp.lt.s32.totalorder %s732_s18, 3  ;;  %s163_s13 = scalar_lea.sflag [#allocation3], %s162_s29 }
  0x14   : > { %s636_s14 = sshra.s32 %s174_s9, 4  ;;  %p640_p3 = pneg %p827_p13  ;;  %s637_s14 = int_to_ptr.hbm [resolvable:$true] %s636_s14 }
  0x15   : > { %s638_s20 = scalar_lea.hbm %s637_s14, 8  ;;  %s643_s25 = scalar_lea.hbm %s930_s0, 16 }
  0x16   : > { %p639_p2 = scmp.ne.s32.totalorder %s637_s14, %s638_s20  ;;  %p644_p5 = scmp.lt.s32.totalorder %s637_s14, %s930_s0 }
  0x17   : > { %p645_p8 = scmp.lt.s32.totalorder %s643_s25, %s638_s20 }
  0x18   : > { %p641_p4 = pnand %p640_p3, %p639_p2 }
  0x19   : > { %p646_p10 = por %p645_p8, %p644_p5 }
  0x1a   : > { %p642_p7 = pneg %p641_p4 }
  0x1c   : > { %p647_p9 = pnand %p646_p10, %p642_p7 }
  0x1e   : > { %650 = shalt.err (!%p647_p9)
}
  0x1f   : > { %581 = dma.hbm_to_vmem [thread:$0]  (!%p827_p13), %s174_s9, 128, %s176_s11, %s163_s13  }
  0x20   : > { %p181_p2 = pnand %p556_p0, %p180_p1 }
  0x21   : > { %s848_s29 = sand.u32 (!%p181_p2), 1, %s724_s16  }
  0x22   : > { %184 = sbr.rel (%p181_p2) target bundleno = 1073 (0x431), region = 36  ;;  %s557_s6 = sshll.u32 (!%p181_p2), %s848_s29, 3 }
  0x23   : > { %s187_s7 = scalar_lea.sflag (!%p181_p2), [#allocation3], %s848_s29  ;;  %s190_s8 = scalar_lea.vmem (!%p181_p2), [#allocation2], %s557_s6 }
  0x27   : > { %711 = dma.done.wait (%p805_p6), %s187_s7, 128  }
  0x28   : > { %713 = vsyncadd (%p805_p6), %s187_s7, 4294967168  ;;  %v734_v0 = vmov 0   ;;  %v858_v1 = vld [vmem:[%s190_s8] sm:$0xff]  ;;  %v863_v2 = vld [vmem:[%s931_s1] sm:$0x3f]  ;;  %vm231_vm0 = vcmask 1043456   ;;  %v449_v59 = vlaneseq }
  0x29   : > { %623 = vset.pattern.permute.xlu0 %v734_v0  ;;  %223 = vst [vmem:[#allocation1] ss:$2 sm:$0xff] %v858_v1  ;;  %vm228_vm1 = vcmask 31744   ;;  %vm276_vm2 = vcmask 1040384   ;;  %v353_v26 = vld [vmem:[%s932_s2] sm:$0xf] }
  0x2a   : > { %220 = vperm.xlu0 %623, %v863_v2   ;;  %v354_v42 = vrot.slane %v863_v2, 1  ;;  %vm382_vm7 = vcmask 24576   ;;  %v735_v46 = vmov 4.0   ;;  %v419_v58 = vld [vmem:[%s933_s3] sm:$0xf]  ;;  %v450_v62 = vshrl.u32 %v449_v59, 7 }
  0x2b   : > { %s573_s14 = sshll.u32 %s783_s19, 3  ;;  %s215_s25 = scalar_lea.vmem [#allocation5], %s557_s6 }
  0x2c   : > { %624 = vset.pattern.permute.xlu2 %v450_v62  ;;  %s475_s23 = scalar_lea.hbm %s934_s4, %s573_s14  ;;  %s477_s30 = sshll.u32 %s215_s25, 4  ;;  %s478_s30 = int_to_ptr.vmem [resolvable:$true] %s477_s30 }
  0x2d   : > { %s479_s5 = sshll.u32 %s475_s23, 4  ;;  %s464_s7 = scalar_lea.sflag [#allocation4], %s848_s29  ;;  %s480_s5 = int_to_ptr.hbm [resolvable:$true] %s479_s5 }
  0x2e   : > { %s680_s8 = sshra.s32 %s480_s5, 4  ;;  %s686_s6 = scalar_lea.hbm %s934_s4, 16  ;;  %s681_s8 = int_to_ptr.hbm [resolvable:$true] %s680_s8 }
  0x2f   : > { %s682_s19 = scalar_lea.hbm %s681_s8, 8  ;;  %p687_p0 = scmp.lt.s32.totalorder %s681_s8, %s934_s4 }
  0x30   : > { %v224_v3 = vld.sshfl [vmem:[#allocation1] sm:$0xff pattern:$0x75316420]  ;;  %v225_v4 = vld.sshfl [vmem:[#allocation1 + $0x8] sm:$0xff pattern:$0x75316420]  ;;  %p683_p6 = scmp.ne.s32.totalorder %s681_s8, %s682_s19  ;;  %p688_p1 = scmp.lt.s32.totalorder %s686_s6, %s682_s19 }
  0x31   : > { %559 = vmatpush.msk.msra.mxu0 %vm231_vm0, %v224_v3  ;;  %561 = vmatpush.msk.msra.mxu1 %vm231_vm0, %v225_v4  ;;  %307 = vst [vmem:[#allocation1] ss:$2 sm:$0xff] %v858_v1 }
  0x32   : > { %560 = vmatmul.msk.f32.vlgmr.msra.gmra.mxu0 %vm228_vm1, %v863_v2  ;;  %562 = vmatmul.msk.f32.vlgmr.msra.gmra.mxu1 %vm228_vm1, %v863_v2  ;;  %p684_p9 = pnand %p683_p6, %p812_p11  ;;  %p689_p3 = por %p688_p1, %p687_p0 }
  0x33   : > { %563 = vmatpush.msk.msrb.mxu0 %vm231_vm0, %v353_v26  ;;  %565 = vmatpush.xpose.msk.msrb.mxu1 %vm228_vm1, %v419_v58 }
  0x34   : > { %625 = vset.pattern.permute.xlu0 %v450_v62  ;;  %p685_p13 = pneg %p684_p9 }
  0x36   : > { %p690_p4 = pnand %p689_p3, %p685_p13 }
  0x38   : > { %v308_v14 = vld.sshfl [vmem:[#allocation1] sm:$0xff pattern:$0x75316420]  ;;  %v309_v15 = vld.sshfl [vmem:[#allocation1 + $0x8] sm:$0xff pattern:$0x75316420] }
  0x39   : > { %327 = vmatpush.xpose.msra.mxu2 %v308_v14  ;;  %347 = vmatpush.xpose.msra.mxu3 %v309_v15  ;;  %v420_v15 = vrot.slane %v863_v2, 4 }
  0x9c   : > { %v221_v5 = vpop.permute.xlu0 %220 }
  0x9d   : > { %v226_v6 = vrot.slane %v221_v5, 5 }
  0xaf   : > { %v253_v7 = vpop.f32.mrf.mxu0  ;;  %v273_v8 = vpop.f32.mrf.mxu1 }
  0xb0   : > { %v254_v9 = vadd.f32 %v253_v7, %v226_v6  ;;  %v274_v10 = vadd.f32 %v273_v8, %v226_v6  ;;  %v412_v8 = vrot.slane %v863_v2, 2 }
  0xb2   : > { %v277_v11 = vsel %vm276_vm2, %v254_v9, -inf  ;;  %v278_v12 = vsel %vm276_vm2, %v274_v10, -inf }
  0xb3   : > { %v279_v13 = vmax.f32 %v277_v11, %v278_v12  ;;  %v415_v11 = vrot.slane %v863_v2, 3 }
  0xb5   : > { %280 = vmax.xlane.f32.xlu0 %v279_v13 }
 0x128   : > { %v281_v16 = vpop.xlane.xlu0 %280 }
 0x129   : > { %v282_v17 = vsub.f32 %v254_v9, %v281_v16  ;;  %v283_v18 = vsub.f32 %v274_v10, %v281_v16 }
 0x12b   : > { %v284_v19 = vmul.f32 1.442695, %v282_v17  ;;  %v286_v20 = vmul.f32 1.442695, %v283_v18 }
 0x12d   : > { %626 = vpow2.f32 %v284_v19  ;;  %v736_v19 = vmov 839922192  }
 0x12e   : > { %628 = vpow2.f32 %v286_v20  ;;  %v457_v20 = vunpack.c.l.s4 %v736_v19 }
 0x133   : > { %v627_v21 = vpop.eup %626 }
 0x134   : > { %v629_v22 = vpop.eup %628  ;;  %328 = vmatmul.f32.vlgmr.msra.gmra.mxu2 %v627_v21  ;;  %v288_v23 = vsel %vm276_vm2, %v627_v21, 0.0  ;;  %v458_v21 = vunpack.c.0.s8 %v457_v20 }
 0x135   : > { %348 = vmatmul.f32.vlgmr.msra.gmra.mxu3 %v629_v22  ;;  %v289_v24 = vsel %vm276_vm2, %v629_v22, 0.0 }
 0x136   : > { %v290_v25 = vadd.f32 %v289_v24, %v288_v23 }
 0x138   : > { %291 = vadd.xlane.f32.xlu1 %v290_v25 }
 0x1ab   : > { %v292_v27 = vpop.xlane.xlu1 %291 }
 0x1ac   : > { %630 = vrcp.f32 %v292_v27  ;;  %v304_v31 = vand.u32 2147483648, %v292_v27  ;;  %v302_v33 = vand.u32 2147483647, %v292_v27  ;;  %vm298_vm4 = vweird.f32 %v292_v27 }
 0x1ad   : > { %632 = vrcp.f32 %v735_v46 }
 0x1ae   : > { %v305_v37 = vor.u32 1.1754944e-38, %v304_v31  ;;  %vm303_vm6 = vcmp.eq.f32.partialorder %v302_v33, 8.507059e+37 }
 0x1b2   : > { %v631_v28 = vpop.eup %630 }
 0x1b3   : > { %v294_v29 = vmul.f32 %v631_v28, %v292_v27  ;;  %vm299_vm3 = vweird.f32 %v631_v28  ;;  %v633_v47 = vpop.eup %632 }
 0x1b4   : > { %vm300_vm5 = vmor %vm298_vm4, %vm299_vm3  ;;  %v387_v48 = vmul.f32 4.0, %v633_v47  ;;  %vm391_vm8 = vweird.f32 %v633_v47 }
 0x1b5   : > { %v295_v30 = vsub.f32 1.0, %v294_v29 }
 0x1b6   : > { %v388_v49 = vsub.f32 1.0, %v387_v48 }
 0x1b7   : > { %v296_v32 = vmul.f32 %v631_v28, %v295_v30  ;;  %v329_v34 = vpop.f32.mrf.mxu2 }
 0x1b8   : > { %v349_v35 = vpop.f32.mrf.mxu3  ;;  %v389_v50 = vmul.f32 %v633_v47, %v388_v49 }
 0x1b9   : > { %v297_v36 = vadd.f32 %v631_v28, %v296_v32  ;;  %v350_v39 = vadd.f32 %v349_v35, %v329_v34 }
 0x1ba   : > { %v390_v51 = vadd.f32 %v633_v47, %v389_v50 }
 0x1bb   : > { %v301_v38 = vsel %vm300_vm5, %v631_v28, %v297_v36 }
 0x1bc   : > { %v306_v40 = vsel %vm303_vm6, %v305_v37, %v301_v38  ;;  %v392_v52 = vsel %vm391_vm8, %v633_v47, %v390_v51 }
 0x1bd   : > { %v352_v41 = vmul.f32 %v350_v39, %v306_v40 }
 0x1bf   : > { %564 = vmatmul.msk.f32.vlgmr.msrb.gmra.mxu0 %vm228_vm1, %v352_v41 }
 0x23c   : > { %v379_v43 = vpop.f32.mrf.mxu0 }
 0x23d   : > { %v380_v44 = vadd.f32 %v379_v43, %v354_v42 }
 0x23f   : > { %v383_v45 = vsel %vm382_vm7, %v380_v44, 0.0 }
 0x240   : > { %384 = vadd.xlane.f32.xlu1 %v383_v45 }
 0x2b3   : > { %v385_v53 = vpop.xlane.xlu1 %384 }
 0x2b4   : > { %v393_v54 = vmul.f32 %v392_v52, %v385_v53 }
 0x2b6   : > { %v394_v55 = vsub.f32 %v380_v44, %v393_v54 }
 0x2b8   : > { %v395_v56 = vmul.f32 %v394_v55, %v394_v55 }
 0x2ba   : > { %v396_v57 = vsel %vm382_vm7, %v395_v56, 0.0 }
 0x2bb   : > { %397 = vadd.xlane.f32.xlu2 %v396_v57 }
 0x32e   : > { %v398_v60 = vpop.xlane.xlu2 %397 }
 0x32f   : > { %v399_v61 = vmul.f32 %v398_v60, %v392_v52 }
 0x331   : > { %v400_v63 = vadd.f32 1e-05, %v399_v61 }
 0x333   : > { %634 = vrsqrt.f32 %v400_v63  ;;  %vm407_vm10 = vweird.f32 %v400_v63 }
 0x339   : > { %v635_v0 = vpop.eup %634 }
 0x33a   : > { %v402_v3 = vmul.f32 %v635_v0, %v400_v63  ;;  %vm408_vm9 = vweird.f32 %v635_v0 }
 0x33b   : > { %vm409_vm11 = vmor %vm407_vm10, %vm408_vm9 }
 0x33c   : > { %v403_v4 = vmul.f32 %v635_v0, %v402_v3 }
 0x33e   : > { %v404_v5 = vmul.f32 0.5, %v403_v4 }
 0x340   : > { %v405_v6 = vsub.f32 1.5, %v404_v5 }
 0x342   : > { %v406_v7 = vmul.f32 %v635_v0, %v405_v6 }
 0x344   : > { %v410_v9 = vsel %vm409_vm11, %v635_v0, %v406_v7 }
 0x345   : > { %v411_v10 = vmul.f32 %v410_v9, %v394_v55 }
 0x347   : > { %v414_v12 = vmul.f32 %v412_v8, %v411_v10 }
 0x349   : > { %v417_v13 = vadd.f32 %v415_v11, %v414_v12 }
 0x34b   : > { %v418_v14 = vmax.f32 %v417_v13, 0.0 }
 0x34d   : > { %566 = vmatmul.msk.f32.vlgmr.msrb.gmra.mxu1 %vm228_vm1, %v418_v14 }
 0x3ca   : > { %v445_v16 = vpop.f32.mrf.mxu1 }
 0x3cb   : > { %v446_v17 = vadd.f32 %v445_v16, %v420_v15 }
 0x3cd   : > { %v448_v18 = vperm.slane %v446_v17, 0 }
 0x3cf   : > { %453 = vperm.xlu2 %624, %v448_v18  }
 0x429   : > { %v454_v22 = vpop.permute.xlu2 %453 }
 0x42a   : > { %v459_v2 = vperm.slane %v454_v22, %v458_v21 }
 0x42c   : > { %v461_v23 = vadd.f32 %v459_v2, %v858_v1 }
 0x42e   : > { %462 = vst [vmem:[%s215_s25] sm:$0xff] %v461_v23 }
 0x42f   : > { %693 = shalt.err (!%p690_p4)
}
 0x430   : > { %576 = dma.vmem_to_hbm [thread:$0]  (%p812_p11), %s478_s30, 128, %s480_s5, %s464_s7  }
 0x431 PF: > { %s491_s29 = sand.u32 1, %s720_s15   ;;  %p940_p7 = scmp.ge.s32.totalorder %s732_s18, 2 }
 0x432   : > { %s492_s12 = scalar_lea.sflag [#allocation4], %s491_s29 }
 0x433   : > { %p583_p5 = pnand %p940_p7, %p816_p12 }
 0x435   : > { %p584_p8 = pneg %p583_p5 }
 0x437   : > { %715 = dma.done.wait (%p584_p8), %s492_s12, 128  }
 0x438   : > { %717 = vsyncadd (%p584_p8), %s492_s12, 4294967168  ;;  %p17_p10 = scmp.ge.s32.totalorder %s787_s21, 4   ;;  %s941_s15 = smov %s724_s16 }
 0x439   : > { %s942_s16 = smov %s728_s17  ;;  %s943_s17 = smov %s799_s24 }
 0x43a   : > { %s944_s18 = smov %s787_s21  ;;  %19 = sbr.rel (!%p17_p10) target bundleno = 5 (0x5), region = 81 }
 0x43f   :  { %498 = vsyncpa [#allocation3], 1 }
 0x440   :  { %500 = vsyncpa [#allocation3 + $0x1], 1 }
 0x441   :  { %501 = vsyncpa [#allocation4], 1 }
 0x442   :  { %503 = vsyncpa [#allocation4 + $0x1], 1 }

</bundles_post_ra>
